<compile_context>
chip_gen: v7x
topology: tpu7x:2x2x1
jax: 0.10.0
libtpu: 0.0.40
codegen_flags: <defaults>
</compile_context>

<pallas_src>
import math

import jax
import jax.numpy as jnp
from jax.experimental import pallas as pl
from jax.experimental.pallas import tpu as pltpu


def _dma_copy_kernel(x_hbm_ref, o_hbm_ref, sem):
    # One whole-buffer HBM->HBM DMA (no VMEM staging, no vector load/store).
    cp = pltpu.make_async_copy(x_hbm_ref, o_hbm_ref, sem)
    cp.start()
    cp.wait()


def _resolve_size(size, total):
    """Resolve a possible -1 in `size` (torch .view semantics)."""
    size = list(size)
    if -1 in size:
        known = 1
        for s in size:
            if s != -1:
                known *= s
        size[size.index(-1)] = total // known
    size = tuple(int(s) for s in size)
    assert math.prod(size) == total, (size, total)
    return size


def pallas_reshape(x: jax.Array, size) -> jax.Array:
    """Equivalent of torch.Tensor.view(size); the data copy is a Pallas HBM->HBM DMA."""
    total = x.size
    size = _resolve_size(size, total)
    nbytes = total * jnp.dtype(x.dtype).itemsize

    out = pl.pallas_call(
        _dma_copy_kernel,
        out_shape=jax.ShapeDtypeStruct(x.shape, x.dtype),
        in_specs=[pl.BlockSpec(memory_space=pl.ANY)],
        out_specs=pl.BlockSpec(memory_space=pl.ANY),
        scratch_shapes=[pltpu.SemaphoreType.DMA],
        cost_estimate=pl.CostEstimate(
            flops=0, transcendentals=0, bytes_accessed=2 * nbytes
        ),
    )(x)

    # Metadata-only reshape to the requested target size (the torch .view).
    # TODO(synk): under jit with a donated input, input_output_aliases={0: 0}
    # would make this a true zero-copy view; kept as an explicit DMA copy here
    # so the kernel is verifiable stand-alone.
    return out.reshape(size)


if __name__ == "__main__":
    key = jax.random.PRNGKey(0)
    k1, k2 = jax.random.split(key)

    # Small NCHW input consistent with typical use of Reshape.
    x = jax.random.normal(k1, (2, 4, 16, 16), dtype=jnp.float32)
    target_size = (2, -1)

    y = pallas_reshape(x, target_size)
    y = jax.block_until_ready(y)

    ref = x.reshape(2, -1)
    assert y.shape == ref.shape, (y.shape, ref.shape)
    assert y.dtype == ref.dtype
    assert bool(jnp.array_equal(y, ref))

    # Second case: element count NOT a multiple of 128 (rejected by the old
    # kernel); exercises the shape-agnostic HBM->HBM DMA path.
    x2 = jax.random.normal(k2, (2, 3, 5, 16), dtype=jnp.float32)  # 480 elems
    y2 = pallas_reshape(x2, (6, -1))
    y2 = jax.block_until_ready(y2)
    ref2 = x2.reshape(6, -1)
    assert y2.shape == ref2.shape, (y2.shape, ref2.shape)
    assert bool(jnp.array_equal(y2, ref2))

    print("KERNEL_OK")
</pallas_src>

<mosaic_0001>
module attributes {stable_mosaic.version = 11 : i64} {
  func.func @_dma_copy_kernel(%arg0: memref<2x4x16x16xf32, #tpu.memory_space<any>>, %arg1: memref<2x4x16x16xf32, #tpu.memory_space<any>>, %arg2: memref<!tpu.dma_semaphore, #tpu.memory_space<semaphore_mem>>) attributes {dimension_semantics = [], scalar_prefetch = 0 : i64, scratch_operands = 1 : i64, tpu.core_type = #tpu.core_type<tc>} {
    tpu.enqueue_dma source(%arg0 : memref<2x4x16x16xf32, #tpu.memory_space<any>>) target(%arg1 : memref<2x4x16x16xf32, #tpu.memory_space<any>>) target_semaphore(%arg2 : memref<!tpu.dma_semaphore, #tpu.memory_space<semaphore_mem>>)
    tpu.wait_dma2 semaphore(%arg2 : memref<!tpu.dma_semaphore, #tpu.memory_space<semaphore_mem>>) src(%arg0 : memref<2x4x16x16xf32, #tpu.memory_space<any>>) dst(%arg1 : memref<2x4x16x16xf32, #tpu.memory_space<any>>)
    return
  }
}

</mosaic_0001>

<bundles_post_ra>
// kernel: tpu_custom_call.1
= control target key start
LH: loop header
LB: loop body
LE: loop exit
PB: predicated region body
PF: predicated region fallthrough
CT: control target
= control target key end

     0   :  { %s36_s6 = smov [#allocation2]   ;;  %s37_s7 = smov [#allocation3]   ;;  %s55_s0 = inlined_call_operand.hbm [shape: f32[2,4,16,16], index: 0, kind: input, shape index: {}]   ;;  %s56_s1 = inlined_call_operand.hbm [shape: f32[2,4,16,16], index: 1, kind: output, shape index: {}]  }
   0x1   :  { %s38_s8 = smov 0  }
   0x2   :  { %18 = dma.general %s55_s0, 2048, %s56_s1, %s36_s6, %s37_s7, [#allocation4], %s38_s8, 0  }
   0x3   :  { %34 = dma.done.wait [#allocation2], 2048 }
   0x4   :  { %35 = vsyncadd [#allocation2], 4294965248 }
   0x5   :  { %24 = vsyncmov [#allocation2] }
   0x8   :  { %s25_s13 = vpop.sfrf %24 }
   0x9   :  { %p30_p0 = scmp.ne.s32.totalorder %s25_s13, 0 }
   0xb   :  { %29 = shalt.err (%p30_p0)  }

</bundles_post_ra>
